<compile_context>
chip_gen: v6e
topology: v6e:2x2x1
jax: 0.10.0
libtpu: 0.0.40
codegen_flags: <defaults>
</compile_context>

<pallas_src>
import numpy as np
import jax
import jax.numpy as jnp
from jax import lax
from jax.experimental import pallas as pl
from jax.experimental.pallas import tpu as pltpu


# ----------------------------------------------------------------------------
# Pallas kernel: bidirectional LSTM over variable-length sequences
# ----------------------------------------------------------------------------
def bilstm_kernel(len_ref, x_ref, wih_ref, b_ref, whh_f_ref, whh_b_ref,
                  out_ref, last_ref, gxf_ref, gxb_ref):
    T, Bp, E = x_ref.shape
    H = whh_f_ref.shape[0]
    G4 = 4 * H

    lengths = len_ref[...]                       # (Bp, 1) int32
    whh_f = whh_f_ref[...]                       # (H, 4H)   gate order [i,f,o,g]
    whh_b = whh_b_ref[...]

    # ---- hoisted input projection: one large MXU GEMM for both directions,
    #      biases folded in.  The recurrence below only does h @ Whh. ----
    x2d = x_ref[...].reshape(T * Bp, E)
    gx = jnp.dot(x2d, wih_ref[...], preferred_element_type=jnp.float32) + b_ref[...]
    gxf_ref[...] = gx[:, :G4].reshape(T, Bp, G4)
    gxb_ref[...] = gx[:, G4:].reshape(T, Bp, G4)

    def lstm_cell(gx_t, h, c, whh):
        gates = gx_t + jnp.dot(h.astype(whh.dtype), whh,
                               preferred_element_type=jnp.float32)
        ifo = jax.nn.sigmoid(gates[:, :3 * H])   # one EUP pass for i, f, o
        g = jnp.tanh(gates[:, 3 * H:])           # one EUP pass for g
        i_g = ifo[:, 0 * H:1 * H]
        f_g = ifo[:, 1 * H:2 * H]
        o_g = ifo[:, 2 * H:3 * H]
        c_new = f_g * c + i_g * g
        h_new = o_g * jnp.tanh(c_new)
        return h_new, c_new

    zeros = jnp.zeros((Bp, H), jnp.float32)

    # ---- interleaved forward (t = s) and backward (t = T-1-s) recurrences ----
    def body(s, carry):
        h_f, c_f, h_b, c_b = carry
        tb = T - 1 - s

        hf_new, cf_new = lstm_cell(gxf_ref[s], h_f, c_f, whh_f)
        hb_new, cb_new = lstm_cell(gxb_ref[tb], h_b, c_b, whh_b)

        mask_f = s < lengths                     # (Bp, 1) bool
        mask_b = tb < lengths

        out_ref[s, :, :H] = jnp.where(mask_f, hf_new, 0.0)
        out_ref[tb, :, H:] = jnp.where(mask_b, hb_new, 0.0)

        h_f = jnp.where(mask_f, hf_new, h_f)
        c_f = jnp.where(mask_f, cf_new, c_f)
        h_b = jnp.where(mask_b, hb_new, h_b)
        c_b = jnp.where(mask_b, cb_new, c_b)
        return h_f, c_f, h_b, c_b

    h_f, _, h_b, _ = lax.fori_loop(0, T, body, (zeros, zeros, zeros, zeros))

    last_ref[:, :H] = h_f
    last_ref[:, H:] = h_b


# ----------------------------------------------------------------------------
# Wrapper (glue: embedding gather, weight repack, batch padding, transpose)
# ----------------------------------------------------------------------------
def _round_up(x, m):
    return ((x + m - 1) // m) * m


def _reorder_gates(w, H):
    # PyTorch packs LSTM gates as [i, f, g, o]; repack as [i, f, o, g] so the
    # kernel applies one sigmoid over a contiguous 3H slice and one tanh over H.
    return jnp.concatenate([w[0:H], w[H:2 * H], w[3 * H:4 * H], w[2 * H:3 * H]],
                           axis=0)


def encoder_rnn_forward(params, data, lengths, *, compute_dtype=jnp.float32):
    """data: (B, T) int32 token ids; lengths: (B,) int32.
    Returns (output (B, T, 2H), last_hidden (B, 2H))."""
    emb_table = params["embedding"]                        # (V, E), row 0 zero (padding_idx)
    # TODO(synk): fuse this gather into the kernel (PrefetchScalarGridSpec over
    # token ids + row gather) to avoid materializing emb through HBM.
    emb = jnp.take(emb_table, data, axis=0)                # (B, T, E)
    B, T, E = emb.shape
    H = params["w_hh_f"].shape[1]

    # Pad batch to a sublane multiple (8); padded rows get length 0 so they
    # never update state and produce exactly-zero outputs.
    Bp = max(8, _round_up(B, 8))
    x_tm = jnp.transpose(emb, (1, 0, 2))                   # (T, B, E) time-major
    x_tm = jnp.pad(x_tm, ((0, 0), (0, Bp - B), (0, 0))).astype(compute_dtype)
    len2d = jnp.pad(lengths.astype(jnp.int32), (0, Bp - B)).reshape(Bp, 1)

    # Repack weights: gate-reorder, transpose to (in, 4H), merge directions,
    # fold b_ih + b_hh into one (1, 8H) bias added once in the hoisted GEMM.
    wih_f = _reorder_gates(params["w_ih_f"], H).T          # (E, 4H)
    wih_b = _reorder_gates(params["w_ih_b"], H).T
    whh_f = _reorder_gates(params["w_hh_f"], H).T          # (H, 4H)
    whh_b = _reorder_gates(params["w_hh_b"], H).T
    b_f = _reorder_gates(params["b_ih_f"] + params["b_hh_f"], H)
    b_b = _reorder_gates(params["b_ih_b"] + params["b_hh_b"], H)

    wih8 = jnp.concatenate([wih_f, wih_b], axis=1).astype(compute_dtype)  # (E, 8H)
    b8 = jnp.concatenate([b_f, b_b]).reshape(1, 8 * H).astype(jnp.float32)
    whh_f = whh_f.astype(compute_dtype)
    whh_b = whh_b.astype(compute_dtype)

    vmem = pl.BlockSpec(memory_space=pltpu.MemorySpace.VMEM)
    out_shapes = (
        jax.ShapeDtypeStruct((T, Bp, 2 * H), jnp.float32),  # [fwd | bwd] hidden, time-major
        jax.ShapeDtypeStruct((Bp, 2 * H), jnp.float32),     # [h_fwd(len-1) | h_bwd(0)]
    )

    # TODO(synk): for very long T*B on v7x (64 MiB VMEM), add a grid over
    # T-chunks ("arbitrary") with h/c carried in VMEM scratch and BlockSpec
    # double-buffering of the x / out tiles.
    out_tm, last = pl.pallas_call(
        bilstm_kernel,
        out_shape=out_shapes,
        in_specs=[vmem] * 6,
        out_specs=(vmem, vmem),
        scratch_shapes=[pltpu.VMEM((T, Bp, 4 * H), jnp.float32),
                        pltpu.VMEM((T, Bp, 4 * H), jnp.float32)],
        compiler_params=pltpu.CompilerParams(vmem_limit_bytes=56 * 1024 * 1024),
    )(len2d, x_tm, wih8, b8, whh_f, whh_b)

    output = jnp.transpose(out_tm[:, :B, :], (1, 0, 2))     # (B, T, 2H)
    last_hidden = last[:B]                                  # (B, 2H)
    return output, last_hidden


# ----------------------------------------------------------------------------
# Pure-numpy reference (mirrors torch.nn.LSTM + pack/pad semantics)
# ----------------------------------------------------------------------------
def _sigmoid(x):
    return 1.0 / (1.0 + np.exp(-x))


def reference_forward(params, data, lengths):
    emb_table = np.asarray(params["embedding"])
    data = np.asarray(data)
    lengths = np.asarray(lengths)
    emb = emb_table[data]                                  # (B, T, E)
    B, T, E = emb.shape
    H = params["w_hh_f"].shape[1]

    def run_dir(wih, whh, bih, bhh, reverse):
        wih, whh = np.asarray(wih), np.asarray(whh)
        bih, bhh = np.asarray(bih), np.asarray(bhh)
        out = np.zeros((B, T, H), np.float32)
        last = np.zeros((B, H), np.float32)
        for b in range(B):
            L = int(lengths[b])
            h = np.zeros((H,), np.float32)
            c = np.zeros((H,), np.float32)
            ts = range(L - 1, -1, -1) if reverse else range(L)
            for t in ts:
                g = emb[b, t] @ wih.T + bih + h @ whh.T + bhh
                i = _sigmoid(g[0 * H:1 * H])
                f = _sigmoid(g[1 * H:2 * H])
                gg = np.tanh(g[2 * H:3 * H])
                o = _sigmoid(g[3 * H:4 * H])
                c = f * c + i * gg
                h = o * np.tanh(c)
                out[b, t] = h
            last[b] = h
        return out, last

    out_f, last_f = run_dir(params["w_ih_f"], params["w_hh_f"],
                            params["b_ih_f"], params["b_hh_f"], reverse=False)
    out_b, last_b = run_dir(params["w_ih_b"], params["w_hh_b"],
                            params["b_ih_b"], params["b_hh_b"], reverse=True)
    output = np.concatenate([out_f, out_b], axis=-1)
    last_hidden = np.concatenate([last_f, last_b], axis=-1)
    return output, last_hidden


# ----------------------------------------------------------------------------
# Deterministic parameter init (shapes follow nn.Embedding / nn.LSTM)
# ----------------------------------------------------------------------------
def init_params(key, vocab_size, embed_size, hidden_size):
    ks = jax.random.split(key, 10)
    H, E, V = hidden_size, embed_size, vocab_size
    bound = 1.0 / np.sqrt(H)

    emb = jax.random.normal(ks[0], (V, E), jnp.float32)
    emb = emb.at[0, :].set(0.0)                            # padding_idx=0

    def u(k, shape):
        return jax.random.uniform(k, shape, jnp.float32, -bound, bound)

    return {
        "embedding": emb,
        "w_ih_f": u(ks[1], (4 * H, E)), "w_hh_f": u(ks[2], (4 * H, H)),
        "b_ih_f": u(ks[3], (4 * H,)),   "b_hh_f": u(ks[4], (4 * H,)),
        "w_ih_b": u(ks[5], (4 * H, E)), "w_hh_b": u(ks[6], (4 * H, H)),
        "b_ih_b": u(ks[7], (4 * H,)),   "b_hh_b": u(ks[8], (4 * H,)),
    }


if __name__ == "__main__":
    VOCAB, EMBED, HIDDEN = 50, 32, 32
    B, T = 2, 8

    key = jax.random.PRNGKey(0)
    kp, kd = jax.random.split(key)
    params = init_params(kp, VOCAB, EMBED, HIDDEN)

    # token ids (0 is padding id); max length == T so pad_packed max matches T.
    data = jax.random.randint(kd, (B, T), 1, VOCAB, dtype=jnp.int32)
    lengths = jnp.array([T, 5], dtype=jnp.int32)
    tmask = jnp.arange(T)[None, :] < lengths[:, None]
    data = jnp.where(tmask, data, 0)

    run = jax.jit(encoder_rnn_forward, static_argnames=("compute_dtype",))

    # f32 compute path (strict check)
    output, last_hidden = run(params, data, lengths)
    output = jax.block_until_ready(output)
    last_hidden = jax.block_until_ready(last_hidden)

    ref_out, ref_last = reference_forward(params, data, lengths)
    assert output.shape == (B, T, 2 * HIDDEN)
    assert last_hidden.shape == (B, 2 * HIDDEN)
    np.testing.assert_allclose(np.asarray(output), ref_out, rtol=1e-4, atol=1e-4)
    np.testing.assert_allclose(np.asarray(last_hidden), ref_last, rtol=1e-4, atol=1e-4)

    # bf16 MXU path (f32 accumulation / state math) — loose check
    out_bf, last_bf = run(params, data, lengths, compute_dtype=jnp.bfloat16)
    out_bf = jax.block_until_ready(out_bf)
    last_bf = jax.block_until_ready(last_bf)
    np.testing.assert_allclose(np.asarray(out_bf), ref_out, rtol=1e-1, atol=1e-1)
    np.testing.assert_allclose(np.asarray(last_bf), ref_last, rtol=1e-1, atol=1e-1)

    print("KERNEL_OK")
</pallas_src>

<mosaic_0001>
module attributes {stable_mosaic.version = 11 : i64} {
  func.func @bilstm_kernel(%arg0: memref<8x1xi32, #tpu.memory_space<vmem>>, %arg1: memref<8x8x32xf32, #tpu.memory_space<vmem>>, %arg2: memref<32x256xf32, #tpu.memory_space<vmem>>, %arg3: memref<1x256xf32, #tpu.memory_space<vmem>>, %arg4: memref<32x128xf32, #tpu.memory_space<vmem>>, %arg5: memref<32x128xf32, #tpu.memory_space<vmem>>, %arg6: memref<8x8x64xf32, #tpu.memory_space<vmem>>, %arg7: memref<8x64xf32, #tpu.memory_space<vmem>>, %arg8: memref<8x8x128xf32, #tpu.memory_space<vmem>>, %arg9: memref<8x8x128xf32, #tpu.memory_space<vmem>>) attributes {dimension_semantics = [], scalar_prefetch = 0 : i64, scratch_operands = 2 : i64, tpu.core_type = #tpu.core_type<tc>} {
    %c0 = arith.constant 0 : index
    %c0_0 = arith.constant 0 : index
    %0 = vector.load %arg0[%c0, %c0_0] : memref<8x1xi32, #tpu.memory_space<vmem>>, vector<8x1xi32>
    %c0_1 = arith.constant 0 : index
    %c0_2 = arith.constant 0 : index
    %1 = vector.load %arg4[%c0_1, %c0_2] : memref<32x128xf32, #tpu.memory_space<vmem>>, vector<32x128xf32>
    %c0_3 = arith.constant 0 : index
    %c0_4 = arith.constant 0 : index
    %2 = vector.load %arg5[%c0_3, %c0_4] : memref<32x128xf32, #tpu.memory_space<vmem>>, vector<32x128xf32>
    %c0_5 = arith.constant 0 : index
    %c0_6 = arith.constant 0 : index
    %c0_7 = arith.constant 0 : index
    %3 = vector.load %arg1[%c0_5, %c0_6, %c0_7] : memref<8x8x32xf32, #tpu.memory_space<vmem>>, vector<8x8x32xf32>
    %4 = vector.shape_cast %3 : vector<8x8x32xf32> to vector<64x32xf32>
    %c0_8 = arith.constant 0 : index
    %c0_9 = arith.constant 0 : index
    %5 = vector.load %arg2[%c0_8, %c0_9] : memref<32x256xf32, #tpu.memory_space<vmem>>, vector<32x256xf32>
    %cst = arith.constant dense<0.000000e+00> : vector<64x256xf32>
    %6 = tpu.matmul %4, %5, %cst {dimension_numbers = #tpu.dot_dimension_numbers<[1], [0], [0], [1], [0, 0, 1, 1], [], []>} : vector<64x32xf32>, vector<32x256xf32>, vector<64x256xf32> -> vector<64x256xf32>
    %c0_10 = arith.constant 0 : index
    %c0_11 = arith.constant 0 : index
    %7 = vector.load %arg3[%c0_10, %c0_11] : memref<1x256xf32, #tpu.memory_space<vmem>>, vector<1x256xf32>
    %8 = vector.broadcast %7 : vector<1x256xf32> to vector<64x256xf32>
    %9 = arith.addf %6, %8 : vector<64x256xf32>
    %10 = vector.extract_strided_slice %9 {offsets = [0, 0], sizes = [64, 128], strides = [1, 1]} : vector<64x256xf32> to vector<64x128xf32>
    %11 = vector.shape_cast %10 : vector<64x128xf32> to vector<8x8x128xf32>
    %c0_12 = arith.constant 0 : index
    %c0_13 = arith.constant 0 : index
    %c0_14 = arith.constant 0 : index
    %12 = vector.load %arg8[%c0_12, %c0_13, %c0_14] : memref<8x8x128xf32, #tpu.memory_space<vmem>>, vector<8x8x128xf32>
    tpu.vector_store %arg8[%c0_12, %c0_13, %c0_14], %11 {strides = array<i32>} : memref<8x8x128xf32, #tpu.memory_space<vmem>>, vector<8x8x128xf32>,
    %13 = vector.extract_strided_slice %9 {offsets = [0, 128], sizes = [64, 128], strides = [1, 1]} : vector<64x256xf32> to vector<64x128xf32>
    %14 = vector.shape_cast %13 : vector<64x128xf32> to vector<8x8x128xf32>
    %c0_15 = arith.constant 0 : index
    %c0_16 = arith.constant 0 : index
    %c0_17 = arith.constant 0 : index
    %15 = vector.load %arg9[%c0_15, %c0_16, %c0_17] : memref<8x8x128xf32, #tpu.memory_space<vmem>>, vector<8x8x128xf32>
    tpu.vector_store %arg9[%c0_15, %c0_16, %c0_17], %14 {strides = array<i32>} : memref<8x8x128xf32, #tpu.memory_space<vmem>>, vector<8x8x128xf32>,
    %cst_18 = arith.constant 0.000000e+00 : f32
    %16 = vector.broadcast %cst_18 : f32 to vector<8x32xf32>
    %c0_i32 = arith.constant 0 : i32
    %c8_i32 = arith.constant 8 : i32
    %17 = arith.addi %c0_i32, %c8_i32 : i32
    %c1_i32 = arith.constant 1 : i32
    %18:4 = scf.for %arg10 = %c0_i32 to %17 step %c1_i32 iter_args(%arg11 = %16, %arg12 = %16, %arg13 = %16, %arg14 = %16) -> (vector<8x32xf32>, vector<8x32xf32>, vector<8x32xf32>, vector<8x32xf32>)  : i32 {
      %c7_i32 = arith.constant 7 : i32
      %21 = arith.subi %c7_i32, %arg10 : i32
      %22 = arith.index_cast %arg10 : i32 to index
      %c0_23 = arith.constant 0 : index
      %c0_24 = arith.constant 0 : index
      %23 = vector.load %arg8[%22, %c0_23, %c0_24] : memref<8x8x128xf32, #tpu.memory_space<vmem>>, vector<1x8x128xf32>
      %24 = vector.shape_cast %23 : vector<1x8x128xf32> to vector<8x128xf32>
      %cst_25 = arith.constant dense<0.000000e+00> : vector<8x128xf32>
      %25 = tpu.matmul %arg11, %1, %cst_25 {dimension_numbers = #tpu.dot_dimension_numbers<[1], [0], [0], [1], [0, 0, 1, 1], [], []>} : vector<8x32xf32>, vector<32x128xf32>, vector<8x128xf32> -> vector<8x128xf32>
      %26 = arith.addf %24, %25 : vector<8x128xf32>
      %27 = vector.extract_strided_slice %26 {offsets = [0, 0], sizes = [8, 96], strides = [1, 1]} : vector<8x128xf32> to vector<8x96xf32>
      %28 = arith.negf %27 : vector<8x96xf32>
      %29 = math.exp %28 : vector<8x96xf32>
      %cst_26 = arith.constant 1.000000e+00 : f32
      %30 = vector.broadcast %cst_26 : f32 to vector<8x96xf32>
      %31 = arith.addf %30, %29 : vector<8x96xf32>
      %32 = arith.divf %30, %31 : vector<8x96xf32>
      %33 = vector.extract_strided_slice %26 {offsets = [0, 96], sizes = [8, 32], strides = [1, 1]} : vector<8x128xf32> to vector<8x32xf32>
      %34 = math.tanh %33 : vector<8x32xf32>
      %35 = vector.extract_strided_slice %32 {offsets = [0, 0], sizes = [8, 32], strides = [1, 1]} : vector<8x96xf32> to vector<8x32xf32>
      %36 = vector.extract_strided_slice %32 {offsets = [0, 32], sizes = [8, 32], strides = [1, 1]} : vector<8x96xf32> to vector<8x32xf32>
      %37 = vector.extract_strided_slice %32 {offsets = [0, 64], sizes = [8, 32], strides = [1, 1]} : vector<8x96xf32> to vector<8x32xf32>
      %38 = arith.mulf %36, %arg12 : vector<8x32xf32>
      %39 = arith.mulf %35, %34 : vector<8x32xf32>
      %40 = arith.addf %38, %39 : vector<8x32xf32>
      %41 = math.tanh %40 : vector<8x32xf32>
      %42 = arith.mulf %37, %41 : vector<8x32xf32>
      %43 = arith.index_cast %21 : i32 to index
      %c0_27 = arith.constant 0 : index
      %c0_28 = arith.constant 0 : index
      %44 = vector.load %arg9[%43, %c0_27, %c0_28] : memref<8x8x128xf32, #tpu.memory_space<vmem>>, vector<1x8x128xf32>
      %45 = vector.shape_cast %44 : vector<1x8x128xf32> to vector<8x128xf32>
      %cst_29 = arith.constant dense<0.000000e+00> : vector<8x128xf32>
      %46 = tpu.matmul %arg13, %2, %cst_29 {dimension_numbers = #tpu.dot_dimension_numbers<[1], [0], [0], [1], [0, 0, 1, 1], [], []>} : vector<8x32xf32>, vector<32x128xf32>, vector<8x128xf32> -> vector<8x128xf32>
      %47 = arith.addf %45, %46 : vector<8x128xf32>
      %48 = vector.extract_strided_slice %47 {offsets = [0, 0], sizes = [8, 96], strides = [1, 1]} : vector<8x128xf32> to vector<8x96xf32>
      %49 = arith.negf %48 : vector<8x96xf32>
      %50 = math.exp %49 : vector<8x96xf32>
      %cst_30 = arith.constant 1.000000e+00 : f32
      %51 = vector.broadcast %cst_30 : f32 to vector<8x96xf32>
      %52 = arith.addf %51, %50 : vector<8x96xf32>
      %53 = arith.divf %51, %52 : vector<8x96xf32>
      %54 = vector.extract_strided_slice %47 {offsets = [0, 96], sizes = [8, 32], strides = [1, 1]} : vector<8x128xf32> to vector<8x32xf32>
      %55 = math.tanh %54 : vector<8x32xf32>
      %56 = vector.extract_strided_slice %53 {offsets = [0, 0], sizes = [8, 32], strides = [1, 1]} : vector<8x96xf32> to vector<8x32xf32>
      %57 = vector.extract_strided_slice %53 {offsets = [0, 32], sizes = [8, 32], strides = [1, 1]} : vector<8x96xf32> to vector<8x32xf32>
      %58 = vector.extract_strided_slice %53 {offsets = [0, 64], sizes = [8, 32], strides = [1, 1]} : vector<8x96xf32> to vector<8x32xf32>
      %59 = arith.mulf %57, %arg14 : vector<8x32xf32>
      %60 = arith.mulf %56, %55 : vector<8x32xf32>
      %61 = arith.addf %59, %60 : vector<8x32xf32>
      %62 = math.tanh %61 : vector<8x32xf32>
      %63 = arith.mulf %58, %62 : vector<8x32xf32>
      %64 = vector.broadcast %arg10 : i32 to vector<8x1xi32>
      %65 = arith.cmpi slt, %64, %0 : vector<8x1xi32>
      %66 = vector.broadcast %21 : i32 to vector<8x1xi32>
      %67 = arith.cmpi slt, %66, %0 : vector<8x1xi32>
      %cst_31 = arith.constant 0.000000e+00 : f32
      %68 = vector.shape_cast %65 : vector<8x1xi1> to vector<8x1xi1>
      %69 = vector.broadcast %68 : vector<8x1xi1> to vector<8x32xi1>
      %70 = vector.broadcast %cst_31 : f32 to vector<8x32xf32>
      %71 = arith.select %69, %42, %70 : vector<8x32xi1>, vector<8x32xf32>
      %72 = arith.index_cast %arg10 : i32 to index
      %c0_32 = arith.constant 0 : index
      %c0_33 = arith.constant 0 : index
      %73 = vector.load %arg6[%72, %c0_32, %c0_33] : memref<8x8x64xf32, #tpu.memory_space<vmem>>, vector<1x8x32xf32>
      %74 = vector.shape_cast %73 : vector<1x8x32xf32> to vector<8x32xf32>
      %75 = vector.shape_cast %71 : vector<8x32xf32> to vector<1x8x32xf32>
      tpu.vector_store %arg6[%72, %c0_32, %c0_33], %75 {strides = array<i32>} : memref<8x8x64xf32, #tpu.memory_space<vmem>>, vector<1x8x32xf32>,
      %cst_34 = arith.constant 0.000000e+00 : f32
      %76 = vector.shape_cast %67 : vector<8x1xi1> to vector<8x1xi1>
      %77 = vector.broadcast %76 : vector<8x1xi1> to vector<8x32xi1>
      %78 = vector.broadcast %cst_34 : f32 to vector<8x32xf32>
      %79 = arith.select %77, %63, %78 : vector<8x32xi1>, vector<8x32xf32>
      %80 = arith.index_cast %21 : i32 to index
      %c0_35 = arith.constant 0 : index
      %c32_36 = arith.constant 32 : index
      %81 = vector.load %arg6[%80, %c0_35, %c32_36] : memref<8x8x64xf32, #tpu.memory_space<vmem>>, vector<1x8x32xf32>
      %82 = vector.shape_cast %81 : vector<1x8x32xf32> to vector<8x32xf32>
      %83 = vector.shape_cast %79 : vector<8x32xf32> to vector<1x8x32xf32>
      tpu.vector_store %arg6[%80, %c0_35, %c32_36], %83 {strides = array<i32>} : memref<8x8x64xf32, #tpu.memory_space<vmem>>, vector<1x8x32xf32>,
      %84 = vector.shape_cast %65 : vector<8x1xi1> to vector<8x1xi1>
      %85 = vector.broadcast %84 : vector<8x1xi1> to vector<8x32xi1>
      %86 = arith.select %85, %42, %arg11 : vector<8x32xi1>, vector<8x32xf32>
      %87 = vector.shape_cast %65 : vector<8x1xi1> to vector<8x1xi1>
      %88 = vector.broadcast %87 : vector<8x1xi1> to vector<8x32xi1>
      %89 = arith.select %88, %40, %arg12 : vector<8x32xi1>, vector<8x32xf32>
      %90 = vector.shape_cast %67 : vector<8x1xi1> to vector<8x1xi1>
      %91 = vector.broadcast %90 : vector<8x1xi1> to vector<8x32xi1>
      %92 = arith.select %91, %63, %arg13 : vector<8x32xi1>, vector<8x32xf32>
      %93 = vector.shape_cast %67 : vector<8x1xi1> to vector<8x1xi1>
      %94 = vector.broadcast %93 : vector<8x1xi1> to vector<8x32xi1>
      %95 = arith.select %94, %61, %arg14 : vector<8x32xi1>, vector<8x32xf32>
      scf.yield %86, %89, %92, %95 : vector<8x32xf32>, vector<8x32xf32>, vector<8x32xf32>, vector<8x32xf32>
    }
    %c8_i32_19 = arith.constant 8 : i32
    %c0_20 = arith.constant 0 : index
    %c0_21 = arith.constant 0 : index
    %19 = vector.load %arg7[%c0_20, %c0_21] : memref<8x64xf32, #tpu.memory_space<vmem>>, vector<8x32xf32>
    tpu.vector_store %arg7[%c0_20, %c0_21], %18#0 {strides = array<i32>} : memref<8x64xf32, #tpu.memory_space<vmem>>, vector<8x32xf32>,
    %c0_22 = arith.constant 0 : index
    %c32 = arith.constant 32 : index
    %20 = vector.load %arg7[%c0_22, %c32] : memref<8x64xf32, #tpu.memory_space<vmem>>, vector<8x32xf32>
    tpu.vector_store %arg7[%c0_22, %c32], %18#2 {strides = array<i32>} : memref<8x64xf32, #tpu.memory_space<vmem>>, vector<8x32xf32>,
    return
  }
}

</mosaic_0001>

<bundles_post_ra>
// kernel: encoder_rnn_forward.1
= control target key start
LH: loop header
LB: loop body
LE: loop exit
PB: predicated region body
PF: predicated region fallthrough
CT: control target
= control target key end

     0   :  { %v671_v3 = vmov 0.0   ;;  %vm62_vm0 = vcmask 261120   ;;  %v52_v26 = vlaneseq  ;;  %s920_s0 = inlined_call_operand.vmem [shape: s32[8,1], index: 0, kind: input, shape index: {}]   ;;  %s921_s4 = inlined_call_operand.vmem [shape: f32[32,128], index: 4, kind: input, shape index: {}]   ;;  %s922_s5 = inlined_call_operand.vmem [shape: f32[32,128], index: 5, kind: input, shape index: {}]   ;;  %s923_s6 = inlined_call_operand.vmem [shape: f32[8,8,64], index: 6, kind: output, shape index: {0}]   ;;  %s924_s7 = inlined_call_operand.vmem [shape: f32[8,64], index: 7, kind: output, shape index: {1}]   ;;  %s925_s2 = inlined_call_operand.vmem [shape: f32[32,256], index: 2, kind: input, shape index: {}]   ;;  %s926_s1 = inlined_call_operand.vmem [shape: f32[8,8,32], index: 1, kind: input, shape index: {}]   ;;  %s927_s3 = inlined_call_operand.vmem [shape: f32[1,256], index: 3, kind: input, shape index: {}]  }
   0x1   :  { %v723_v0 = vld [vmem:[%s920_s0] sm:$0xff]  ;;  %v733_v2 = vld [vmem:[%s921_s4 + $0x8] sm:$0xff]  ;;  %151 = vmatprep.mubr.f32.mxu0 %v671_v3  ;;  %175 = vmatprep.mubr.f32.mxu1 %v671_v3  ;;  %v738_v4 = vld [vmem:[%s921_s4 + $0x10] sm:$0xff] }
   0x2   :  { %v728_v1 = vld [vmem:[%s921_s4] sm:$0xff]  ;;  %v743_v5 = vld [vmem:[%s921_s4 + $0x18] sm:$0xff]  ;;  %v753_v7 = vld [vmem:[%s922_s5 + $0x8] sm:$0xff]  ;;  %v53_v27 = vshrl.u32 %v52_v26, 7 }
   0x3   :  { %v748_v6 = vld [vmem:[%s922_s5] sm:$0xff]  ;;  %v758_v8 = vld [vmem:[%s922_s5 + $0x10] sm:$0xff]  ;;  %v763_v9 = vld [vmem:[%s922_s5 + $0x18] sm:$0xff] }
   0x4   :  { %v49_v10 = vld [vmem:[%s925_s2 + $0x38] sm:$0xff]  ;;  %v48_v11 = vld [vmem:[%s925_s2 + $0x30] sm:$0xff]  ;;  %v47_v12 = vld [vmem:[%s925_s2 + $0x28] sm:$0xff]  ;;  %v54_v28 = vsub.s32 0, %v53_v27  ;;  %v58_v30 = vsub.s32 1, %v53_v27 }
   0x5   :  { %111 = vmatprep.subr.mxu0 %v49_v10  ;;  %556 = vmatprep.subr.mxu1 %v49_v10  ;;  %v46_v13 = vld [vmem:[%s925_s2 + $0x20] sm:$0xff]  ;;  %v45_v14 = vld [vmem:[%s925_s2 + $0x18] sm:$0xff]  ;;  %v44_v15 = vld [vmem:[%s925_s2 + $0x10] sm:$0xff]  ;;  %v824_v10 = vmov 0.0  }
   0x6   :  { %112 = vmatpush1.msra.mxu0 %v48_v11  ;;  %560 = vmatpush1.msra.mxu1 %v48_v11  ;;  %v43_v16 = vld [vmem:[%s925_s2 + $0x8] sm:$0xff]  ;;  %v42_v17 = vld [vmem:[%s925_s2] sm:$0xff]  ;;  %v36_v22 = vld [vmem:[%s926_s1 + $0x10] sm:$0xff]  ;;  %v826_v11 = vmov 0.0  }
   0x7   :  { %113 = vmatprep.subr.mxu0 %v47_v12  ;;  %557 = vmatprep.subr.mxu1 %v47_v12  ;;  %v34_v18 = vld [vmem:[%s926_s1] sm:$0xff]  ;;  %v35_v20 = vld [vmem:[%s926_s1 + $0x8] sm:$0xff]  ;;  %v40_v23 = vld [vmem:[%s926_s1 + $0x30] sm:$0xff]  ;;  %v828_v12 = vmov 0.0  }
   0x8   :  { %114 = vmatpush1.msra.mxu0 %v46_v13  ;;  %561 = vmatpush1.msra.mxu1 %v46_v13  ;;  %v38_v19 = vld [vmem:[%s926_s1 + $0x20] sm:$0xff]  ;;  %v39_v21 = vld [vmem:[%s926_s1 + $0x28] sm:$0xff]  ;;  %v37_v24 = vld [vmem:[%s926_s1 + $0x18] sm:$0xff]  ;;  %v830_v13 = vmov 0.0  }
   0x9   :  { %115 = vmatprep.subr.mxu0 %v45_v14  ;;  %558 = vmatprep.subr.mxu1 %v45_v14  ;;  %v41_v25 = vld [vmem:[%s926_s1 + $0x38] sm:$0xff]  ;;  %v50_v29 = vld [vmem:[%s927_s3] sm:$0x3]  ;;  %s832_s1 = smov 0  }
   0xa   :  { %116 = vmatpush1.msra.mxu0 %v44_v15  ;;  %562 = vmatpush1.msra.mxu1 %v44_v15  ;;  %v55_v31 = vrot.slane %v50_v29, %v54_v28  ;;  %v59_v32 = vrot.slane %v50_v29, %v58_v30 }
   0xb   :  { %117 = vmatprep.subr.mxu0 %v43_v16  ;;  %559 = vmatprep.subr.mxu1 %v43_v16 }
   0xc   :  { %118 = vmatpush1.msra.mxu0 %v42_v17  ;;  %563 = vmatpush1.msra.mxu1 %v42_v17 }
   0xd   :  { %510 = vmatmul.mubr.msk.f32.vlgmr.msra.gmra.mxu0 %vm62_vm0, %v34_v18  ;;  %514 = vmatmul.mubr.msk.f32.vlgmr.msra.gmra.mxu1 %vm62_vm0, %v38_v19 }
   0xe   :  { %157 = vmatprep.mubr.f32.mxu0 %v671_v3  ;;  %181 = vmatprep.mubr.f32.mxu1 %v671_v3 }
  0x11   :  { %511 = vmatmul.mubr.msk.f32.gmra.mxu0 %vm62_vm0, %v35_v20  ;;  %515 = vmatmul.mubr.msk.f32.gmra.mxu1 %vm62_vm0, %v39_v21 }
  0x12   :  { %163 = vmatprep.mubr.f32.mxu0 %v671_v3  ;;  %187 = vmatprep.mubr.f32.mxu1 %v671_v3 }
  0x15   :  { %512 = vmatmul.mubr.msk.f32.gmra.mxu0 %vm62_vm0, %v36_v22  ;;  %516 = vmatmul.mubr.msk.f32.gmra.mxu1 %vm62_vm0, %v40_v23 }
  0x16   :  { %169 = vmatprep.mubr.f32.mxu0 %v671_v3  ;;  %193 = vmatprep.mubr.f32.mxu1 %v671_v3 }
  0x19   :  { %513 = vmatmul.mubr.msk.f32.gmra.mxu0 %vm62_vm0, %v37_v24  ;;  %517 = vmatmul.mubr.msk.f32.gmra.mxu1 %vm62_vm0, %v41_v25 }
  0xcd   :  { %v153_v33 = vpop.f32.mrf.mxu0  ;;  %v177_v34 = vpop.f32.mrf.mxu1 }
  0xce   :  { %v154_v35 = vadd.f32 %v153_v33, %v55_v31  ;;  %v178_v36 = vadd.f32 %v177_v34, %v55_v31 }
  0xcf   :  { %v155_v37 = vpop.f32.mrf.mxu0  ;;  %v179_v38 = vpop.f32.mrf.mxu1 }
  0xd0   :  { %200 = vst [vmem:[#allocation2] sm:$0xff] %v154_v35  ;;  %204 = vst [vmem:[#allocation2 + $0x20] sm:$0xff] %v178_v36  ;;  %v156_v39 = vadd.f32 %v155_v37, %v59_v32  ;;  %v180_v40 = vadd.f32 %v179_v38, %v59_v32 }
  0xd1   :  { %v159_v41 = vpop.f32.mrf.mxu0  ;;  %v183_v42 = vpop.f32.mrf.mxu1 }
  0xd2   :  { %208 = vst [vmem:[#allocation3] sm:$0xff] %v156_v39  ;;  %212 = vst [vmem:[#allocation3 + $0x20] sm:$0xff] %v180_v40  ;;  %v160_v43 = vadd.f32 %v159_v41, %v55_v31  ;;  %v184_v44 = vadd.f32 %v183_v42, %v55_v31 }
  0xd3   :  { %v161_v45 = vpop.f32.mrf.mxu0  ;;  %v185_v46 = vpop.f32.mrf.mxu1 }
  0xd4   :  { %201 = vst [vmem:[#allocation2 + $0x8] sm:$0xff] %v160_v43  ;;  %205 = vst [vmem:[#allocation2 + $0x28] sm:$0xff] %v184_v44  ;;  %v162_v47 = vadd.f32 %v161_v45, %v59_v32  ;;  %v186_v48 = vadd.f32 %v185_v46, %v59_v32 }
  0xd5   :  { %v165_v49 = vpop.f32.mrf.mxu0  ;;  %v189_v50 = vpop.f32.mrf.mxu1 }
  0xd6   :  { %209 = vst [vmem:[#allocation3 + $0x8] sm:$0xff] %v162_v47  ;;  %213 = vst [vmem:[#allocation3 + $0x28] sm:$0xff] %v186_v48  ;;  %v166_v51 = vadd.f32 %v165_v49, %v55_v31  ;;  %v190_v52 = vadd.f32 %v189_v50, %v55_v31 }
  0xd7   :  { %v167_v53 = vpop.f32.mrf.mxu0  ;;  %v191_v54 = vpop.f32.mrf.mxu1 }
  0xd8   :  { %202 = vst [vmem:[#allocation2 + $0x10] sm:$0xff] %v166_v51  ;;  %206 = vst [vmem:[#allocation2 + $0x30] sm:$0xff] %v190_v52  ;;  %v168_v55 = vadd.f32 %v167_v53, %v59_v32  ;;  %v192_v56 = vadd.f32 %v191_v54, %v59_v32 }
  0xd9   :  { %v171_v57 = vpop.f32.mrf.mxu0  ;;  %v195_v58 = vpop.f32.mrf.mxu1 }
  0xda   :  { %210 = vst [vmem:[#allocation3 + $0x10] sm:$0xff] %v168_v55  ;;  %214 = vst [vmem:[#allocation3 + $0x30] sm:$0xff] %v192_v56  ;;  %v172_v59 = vadd.f32 %v171_v57, %v55_v31  ;;  %v196_v60 = vadd.f32 %v195_v58, %v55_v31 }
  0xdb   :  { %v173_v61 = vpop.f32.mrf.mxu0  ;;  %v197_v62 = vpop.f32.mrf.mxu1 }
  0xdc   :  { %203 = vst [vmem:[#allocation2 + $0x18] sm:$0xff] %v172_v59  ;;  %207 = vst [vmem:[#allocation2 + $0x38] sm:$0xff] %v196_v60  ;;  %v174_v63 = vadd.f32 %v173_v61, %v59_v32  ;;  %v198_v3 = vadd.f32 %v197_v62, %v59_v32 }
  0xde   :  { %211 = vst [vmem:[#allocation3 + $0x18] sm:$0xff] %v174_v63  ;;  %215 = vst [vmem:[#allocation3 + $0x38] sm:$0xff] %v198_v3 }
  0xdf LB: > { %v672_v14 = vmov 0.0   ;;  %s673_s3 = smov 64   ;;  %vm674_vm1 = vmmov 0   ;;  %s518_s24 = sshll.u32 %s669_s1, 3  ;;  %v675_v25 = vmov 0   ;;  %v433_v34 = vstv %s669_s1  ;;  %s669_s1 = sphi %s832_s1, %s221_s1   ;;  %v665_v13 = vphi %v830_v13, %v929_v13   ;;  %v661_v12 = vphi %v828_v12, %v463_v12   ;;  %v657_v11 = vphi %v826_v11, %v928_v11   ;;  %v653_v10 = vphi %v824_v10, %v465_v10  }
  0xe0   : > { %534 = vmatprep.subr.mxu0 %v672_v14  ;;  %545 = vmatprep.subr.mxu1 %v672_v14  ;;  %s226_s5 = ssub.s32 7, %s669_s1  ;;  %s228_s26 = scalar_lea.vmem [#allocation2], %s518_s24  ;;  %vm434_vm2 = vcmp.lt.s32.totalorder %v433_v34, %v723_v0  ;;  %vm460_vm6 = vcmask 523520  }
  0xe1   : > { %231 = vrot.lane.b32.xlu0 %v665_v13, %s673_s3  ;;  %535 = vmatpush3.msra.mxu0 %v743_v5  ;;  %s867_s25 = sshll.u32 %s226_s5, 3  ;;  %s676_s28 = smov 32   ;;  %v435_v38 = vstv %s226_s5  ;;  %v437_v41 = vsel %vm434_vm2, 1, %v675_v25 }
  0xe2   : > { %536 = vmatprep.subr.mxu0 %v672_v14  ;;  %546 = vmatpush3.msra.mxu1 %v763_v9  ;;  %s331_s27 = scalar_lea.vmem [#allocation3], %s867_s25  ;;  %vm436_vm3 = vcmp.lt.s32.totalorder %v435_v38, %v723_v0  ;;  %s677_s29 = smov 96  }
  0xe3   : > { %537 = vmatpush3.msra.mxu0 %v738_v4  ;;  %547 = vmatprep.subr.mxu1 %v672_v14  ;;  %v229_v17 = vld [vmem:[%s228_s26] sm:$0xff]  ;;  %v449_v43 = vsel %vm436_vm3, 1, %v675_v25  ;;  %s447_s0 = scalar_lea.vmem %s923_s6, %s518_s24  ;;  %s459_s11 = scalar_lea.vmem %s923_s6, %s867_s25 }
  0xe4   : > { %538 = vmatprep.subr.mxu0 %v672_v14  ;;  %542 = vmatprep.mubr.msk.f32.mxu0 %vm674_vm1, %v672_v14  ;;  %s221_s1 = sadd.s32 1, %s669_s1  }
  0xe5   : > { %334 = vrot.lane.b32.xlu0 %v657_v11, %s673_s3  ;;  %539 = vmatpush3.msra.mxu0 %v733_v2  ;;  %v332_v21 = vld [vmem:[%s331_s27] sm:$0xff]  ;;  %p218_p0 = scmp.ge.s32.totalorder %s221_s1, 8  }
  0xe6   : > { %540 = vmatprep.subr.mxu0 %v672_v14  ;;  %548 = vmatpush3.msra.mxu1 %v758_v8  ;;  %s678_s2 = smov (%p218_p0), 64   ;;  %s679_s12 = smov (%p218_p0), 96  }
  0xe7   : > { %541 = vmatpush3.msra.mxu0 %v728_v1  ;;  %549 = vmatprep.subr.mxu1 %v672_v14 }
  0xe8   : > { %550 = vmatpush3.msra.mxu1 %v753_v7  ;;  %553 = vmatprep.mubr.msk.f32.mxu1 %vm674_vm1, %v672_v14 }
  0xe9   : > { %551 = vmatprep.subr.mxu1 %v672_v14  ;;  %613 = vset.pattern.permute.xlu0 %v675_v25 }
  0xea   : > { %552 = vmatpush3.msra.mxu1 %v748_v6  ;;  %614 = vset.pattern.permute.xlu1 %v675_v25 }
 0x153   : > { %v232_v15 = vpop.permute.xlu0 %231 }
 0x154   : > { %543 = vmatmul.mubr.msk.f32.vlgmr.msra.gmra.mxu0 %vm62_vm0, %v232_v15 }
 0x157   : > { %v335_v16 = vpop.permute.xlu0 %334 }
 0x158   : > { %554 = vmatmul.mubr.msk.f32.vlgmr.msra.gmra.mxu1 %vm62_vm0, %v335_v16 }
 0x214   : > { %v301_v18 = vpop.f32.mrf.mxu0 }
 0x215   : > { %v305_v19 = vadd.f32 %v301_v18, %v229_v17 }
 0x216   : > { %v544_v20 = vpop.f32.mrf.mxu0 }
 0x217   : > { %615 = vtanh.f32 %v305_v19  ;;  %v520_v28 = vmul.f32 -1.442695, %v305_v19 }
 0x218   : > { %v404_v22 = vpop.f32.mrf.mxu1 }
 0x219   : > { %v408_v23 = vadd.f32 %v404_v22, %v332_v21 }
 0x21a   : > { %v555_v24 = vpop.f32.mrf.mxu1 }
 0x21b   : > { %617 = vtanh.f32 %v408_v23  ;;  %v523_v29 = vmul.f32 -1.442695, %v408_v23 }
 0x21c   : > { %619 = vpow2.f32 %v520_v28 }
 0x21d   : > { %621 = vpow2.f32 %v523_v29 }
 0x224   : > { %v616_v26 = vpop.eup %615 }
 0x225   : > { %315 = vrot.lane.b32.xlu1 %v616_v26, %s676_s28 }
 0x228   : > { %v618_v27 = vpop.eup %617 }
 0x229   : > { %418 = vrot.lane.b32.xlu1 %v618_v27, %s676_s28  ;;  %v620_v30 = vpop.eup %619 }
 0x22a   : > { %v309_v31 = vadd.f32 1.0, %v620_v30  ;;  %v622_v32 = vpop.eup %621 }
 0x22b   : > { %v412_v33 = vadd.f32 1.0, %v622_v32 }
 0x22c   : > { %623 = vrcp.f32 %v309_v31 }
 0x22d   : > { %625 = vrcp.f32 %v412_v33 }
 0x239   : > { %v624_v35 = vpop.eup %623 }
 0x23a   : > { %v626_v39 = vpop.eup %625  ;;  %v313_v44 = vmul.f32 %v661_v12, %v624_v35 }
 0x23b   : > { %v416_v47 = vmul.f32 %v653_v10, %v626_v39 }
 0x297   : > { %v316_v36 = vpop.permute.xlu1 %315 }
 0x298   : > { %v318_v37 = vmul.f32 %v624_v35, %v316_v36 }
 0x29a   : > { %320 = vrot.lane.b32.xlu0 %v318_v37, %s676_s28 }
 0x29b   : > { %v419_v40 = vpop.permute.xlu1 %418 }
 0x29c   : > { %v421_v42 = vmul.f32 %v626_v39, %v419_v40 }
 0x29e   : > { %439 = vperm.xlu0 %613, %v437_v41   ;;  %423 = vrot.lane.b32.xlu1 %v421_v42, %s676_s28 }
 0x2a2   : > { %451 = vperm.xlu1 %614, %v449_v43  }
 0x30c   : > { %v321_v45 = vpop.permute.xlu0 %320 }
 0x30d   : > { %v323_v46 = vadd.f32 %v321_v45, %v313_v44 }
 0x30f   : > { %627 = vtanh.f32 %v323_v46 }
 0x310   : > { %v424_v48 = vpop.permute.xlu1 %423 }
 0x311   : > { %v426_v49 = vadd.f32 %v424_v48, %v416_v47 }
 0x313   : > { %629 = vtanh.f32 %v426_v49 }
 0x319   : > { %v440_v50 = vpop.permute.xlu0 %439 }
 0x31a   : > { %vm441_vm4 = vcmp.eq.s32.totalorder %v440_v50, 1 }
 0x31b   : > { %v463_v12 = vsel %vm441_vm4, %v323_v46, %v661_v12  }
 0x31c   : > { %v628_v51 = vpop.eup %627 }
 0x31d   : > { %v452_v52 = vpop.permute.xlu1 %451  ;;  %326 = vrot.lane.b32.xlu1 %v628_v51, %s676_s28 }
 0x31e   : > { %vm453_vm5 = vcmp.eq.s32.totalorder %v452_v52, 1 }
 0x31f   : > { %v465_v10 = vsel %vm453_vm5, %v426_v49, %v653_v10  }
 0x320   : > { %v630_v53 = vpop.eup %629 }
 0x321   : > { %429 = vrot.lane.b32.xlu0 %v630_v53, %s676_s28 }
 0x38f   : > { %v327_v54 = vpop.permute.xlu1 %326 }
 0x390   : > { %v329_v55 = vmul.f32 %v624_v35, %v327_v54 }
 0x392   : > { %v462_v56 = vsel %vm441_vm4, %v329_v55, %v665_v13   ;;  %v442_v57 = vsel %vm441_vm4, %v329_v55, 0.0 }
 0x393   : > { %444 = vrot.lane.b32.xlu1 %v442_v57, %s673_s3  ;;  %v430_v58 = vpop.permute.xlu0 %429  ;;  %v929_v13 = vmov %v462_v56 }
 0x394   : > { %v432_v59 = vmul.f32 %v626_v39, %v430_v58 }
 0x396   : > { %v464_v60 = vsel %vm453_vm5, %v432_v59, %v657_v11   ;;  %v454_v61 = vsel %vm453_vm5, %v432_v59, 0.0 }
 0x397   : > { %456 = vrot.lane.b32.xlu0 %v454_v61, %s677_s29  ;;  %v928_v11 = vmov %v464_v60 }
 0x39b   :  { %467 = vrot.lane.b32.xlu0 (%p218_p0), %v462_v56, %s678_s2 }
 0x39f   :  { %472 = vrot.lane.b32.xlu0 (%p218_p0), %v464_v60, %s679_s12 }
 0x405   : > { %v445_v62 = vpop.permute.xlu1 %444 }
 0x406   : > { %448 = vst.msk [vmem:[%s447_s0] sm:$0xff] %vm62_vm0, %v445_v62  ;;  %220 = sbr.rel (!%p218_p0) target bundleno = 223 (0xdf), region = 63 }
 0x409   : > { %v457_v63 = vpop.permute.xlu0 %456 }
 0x40a   : > { %461 = vst.msk [vmem:[%s459_s11] sm:$0xff] %vm460_vm6, %v457_v63 }
 0x40d   :  { %v468_v3 = vpop.permute.xlu0 %467 }
 0x40e   :  { %470 = vst.msk [vmem:[%s924_s7] sm:$0xff] %vm62_vm0, %v468_v3 }
 0x411   :  { %v473_v13 = vpop.permute.xlu0 %472 }
 0x412   :  { %476 = vst.msk [vmem:[%s924_s7] sm:$0xff] %vm460_vm6, %v473_v13 }

</bundles_post_ra>
